<compile_context>
chip_gen: v7x
topology: tpu7x:2x2x1
jax: 0.10.0
libtpu: 0.0.40
codegen_flags: <defaults>
</compile_context>

<pallas_src>
import functools

import jax
import jax.numpy as jnp
from jax.experimental import pallas as pl
from jax.experimental.pallas import tpu as pltpu


def _mean_readout_kernel(x_ref, o_ref, *scratch, n_total, tn, need_mask):
    """Sum over the node axis; scale by 1/N and cast on the last node step."""
    # f32 inputs accumulate straight into the resident output block.
    acc_ref = scratch[0] if scratch else o_ref
    n_step = pl.program_id(2)
    n_last = pl.num_programs(2) - 1

    @pl.when(n_step == 0)
    def _():
        acc_ref[...] = jnp.zeros_like(acc_ref)

    if need_mask:
        # Hot path: every full tile accumulates unmasked.
        @pl.when(n_step != n_last)
        def _():
            acc_ref[...] += jnp.sum(x_ref[...], axis=1, dtype=jnp.float32)

        # Trailing tile only: cheap (1, tn, 1) predicate, broadcast by where.
        @pl.when(n_step == n_last)
        def _():
            valid = jax.lax.broadcasted_iota(jnp.int32, (1, tn, 1), 1) < (
                n_total - n_step * tn
            )
            x = jnp.where(valid, x_ref[...], 0)
            acc_ref[...] += jnp.sum(x, axis=1, dtype=jnp.float32)
    else:
        acc_ref[...] += jnp.sum(x_ref[...], axis=1, dtype=jnp.float32)

    @pl.when(n_step == n_last)
    def _():
        o_ref[...] = (acc_ref[...] * (1.0 / n_total)).astype(o_ref.dtype)


def _choose_tiles(B, N, D, itemsize, tile_budget):
    """Pick (tb, tn, td) respecting the (8,128)-or-full rule and a VMEM budget."""
    # Batch tile: full batch when tiny, else a multiple of 8 (capped at 128).
    tb = B if B <= 8 else max(8, min(128, (B // 8) * 8))
    td = D  # hidden (lane) tile: full D unless split below

    # v7x megacore: guarantee >= 2 "parallel" grid steps where it is cheap.
    if pl.cdiv(B, tb) == 1:
        if D >= 256 and D % 256 == 0:
            td = D // 2                                  # split hidden axis
        elif B > 8:
            tb = max(8, ((tb // 2 + 7) // 8) * 8)        # halve batch tile

    # Jointly bound (tb, td) so even an 8-row node tile respects the budget.
    while B > 8 and tb > 8 and tb * 8 * td * itemsize > tile_budget:
        tb = max(8, ((tb // 2 + 7) // 8) * 8)
    while td > 128 and td % 256 == 0 and tb * 8 * td * itemsize > tile_budget:
        td //= 2

    # Node tile: largest within budget; prefer a multiple of 8 dividing N so
    # the trailing-tile mask is never needed.
    max_tn = max(1, tile_budget // max(1, tb * td * itemsize))
    if N <= max_tn:
        tn = N
    else:
        tn_cap = max(8, (max_tn // 8) * 8)
        tn = tn_cap
        t = tn_cap
        while t >= max(8, tn_cap // 2):
            if N % t == 0:
                tn = t
                break
            t -= 8
    return tb, tn, td


def mean_readout(x, node_axis=1, *, force_pallas=False, tile_budget=None):
    """Pallas equivalent of ModuleMeanReadout.forward(x, node_axis)."""
    zeros = jnp.zeros((1, 1, 1), dtype=jnp.float32)

    # Fall back to plain XLA for non-default axes / ranks, for tiny inputs
    # (launch overhead dominates), and for small narrow-lane (D % 128 != 0)
    # readouts where a masked partial vst would dominate anyway.
    small = (x.size < 16384) or (
        x.ndim == 3 and x.shape[-1] % 128 != 0 and x.size < (1 << 20)
    )
    if node_axis != 1 or x.ndim != 3 or (not force_pallas and small):
        return jnp.mean(x, axis=node_axis), zeros

    B, N, D = x.shape
    itemsize = jnp.dtype(x.dtype).itemsize

    # Per-generation VMEM capacity (v5e/v6e 128 MiB, v7x 64 MiB per core).
    try:
        vmem_cap = int(pltpu.get_tpu_info().vmem_capacity_bytes)
    except Exception:  # pragma: no cover - be conservative off-TPU / old jax
        vmem_cap = 64 << 20
    if tile_budget is None:
        tile_budget = 16 << 20
    tile_budget = max(64 << 10, min(tile_budget, vmem_cap // 8))

    tb, tn, td = _choose_tiles(B, N, D, itemsize, tile_budget)
    grid_b, grid_d, grid_n = pl.cdiv(B, tb), pl.cdiv(D, td), pl.cdiv(N, tn)
    need_mask = (N % tn) != 0
    direct_acc = x.dtype == jnp.float32   # accumulate in-place in o_ref

    in_tile = tb * tn * td * itemsize
    out_tile = tb * td * itemsize
    acc_bytes = 0 if direct_acc else tb * td * 4
    vmem_needed = 2 * in_tile + 2 * out_tile + acc_bytes
    vmem_limit = int(min(vmem_cap * 3 // 4,
                         max(32 << 20, vmem_needed + (8 << 20))))

    kernel = functools.partial(
        _mean_readout_kernel, n_total=N, tn=tn, need_mask=need_mask
    )
    scratch = [] if direct_acc else [pltpu.VMEM((tb, td), jnp.float32)]

    mean = pl.pallas_call(
        kernel,
        out_shape=jax.ShapeDtypeStruct((B, D), x.dtype),
        grid_spec=pltpu.PrefetchScalarGridSpec(
            num_scalar_prefetch=0,
            grid=(grid_b, grid_d, grid_n),
            in_specs=[pl.BlockSpec((tb, tn, td), lambda b, d, n: (b, n, d))],
            out_specs=pl.BlockSpec((tb, td), lambda b, d, n: (b, d)),
            scratch_shapes=scratch,
        ),
        compiler_params=pltpu.CompilerParams(
            dimension_semantics=("parallel", "parallel", "arbitrary"),
            vmem_limit_bytes=vmem_limit,
        ),
        cost_estimate=pl.CostEstimate(
            flops=B * N * D,
            transcendentals=0,
            bytes_accessed=B * N * D * itemsize + B * D * itemsize,
        ),
    )(x)

    return mean, zeros


if __name__ == "__main__":
    key = jax.random.PRNGKey(0)

    # 1) Small module-typical readout: batch=2, nodes=8, hidden=32.
    #    Force the Pallas path so the kernel actually runs (f32 direct-acc path).
    x_small = jax.random.normal(key, (2, 8, 32), dtype=jnp.float32)
    mean_small, zeros_out = mean_readout(x_small, node_axis=1, force_pallas=True)
    jax.block_until_ready((mean_small, zeros_out))
    ref_small = jnp.mean(x_small, axis=1)
    assert mean_small.shape == (2, 32)
    assert zeros_out.shape == (1, 1, 1) and zeros_out.dtype == jnp.float32
    assert jnp.allclose(mean_small, ref_small, atol=1e-5, rtol=1e-5)
    assert jnp.all(zeros_out == 0.0)

    # 2) Tiled grid + masked trailing node tile (N % TN != 0 under a tiny budget)
    #    and batch-tile halving for >=2 parallel grid steps.
    x_big = jax.random.normal(jax.random.PRNGKey(1), (16, 100, 128),
                              dtype=jnp.float32)
    mean_big, _ = mean_readout(x_big, node_axis=1, force_pallas=True,
                               tile_budget=256 * 1024)
    jax.block_until_ready(mean_big)
    ref_big = jnp.mean(x_big, axis=1)
    assert mean_big.shape == (16, 128)
    assert jnp.allclose(mean_big, ref_big, atol=1e-5, rtol=1e-5)

    # 3) bf16 input -> f32 scratch-accumulator path + hidden-axis (D) split.
    x_bf16 = jax.random.normal(jax.random.PRNGKey(2), (4, 64, 256),
                               dtype=jnp.float32).astype(jnp.bfloat16)
    mean_bf16, _ = mean_readout(x_bf16, node_axis=1, force_pallas=True)
    jax.block_until_ready(mean_bf16)
    ref_bf16 = jnp.mean(x_bf16.astype(jnp.float32), axis=1)
    assert mean_bf16.shape == (4, 256) and mean_bf16.dtype == jnp.bfloat16
    assert jnp.allclose(mean_bf16.astype(jnp.float32), ref_bf16,
                        atol=2e-2, rtol=2e-2)

    print("KERNEL_OK")
</pallas_src>

<mosaic_0001>
module attributes {stable_mosaic.version = 11 : i64} {
  func.func @_mean_readout_kernel(%arg0: i32, %arg1: i32, %arg2: i32, %arg3: memref<2x8x32xf32, #tpu.memory_space<vmem>>, %arg4: memref<2x32xf32, #tpu.memory_space<vmem>>) attributes {dimension_semantics = [#tpu.dimension_semantics<parallel>, #tpu.dimension_semantics<parallel>, #tpu.dimension_semantics<arbitrary>], iteration_bounds = array<i64: 1, 1, 1>, scalar_prefetch = 0 : i64, scratch_operands = 0 : i64, tpu.core_type = #tpu.core_type<tc>, window_params = [{transform_indices = @transform_0, window_bounds = array<i64: 2, 8, 32>}, {transform_indices = @transform_1, window_bounds = array<i64: 2, 32>}]} {
    %c0_i32 = arith.constant 0 : i32
    %0 = arith.cmpi eq, %arg2, %c0_i32 : i32
    %1 = arith.extui %0 : i1 to i32
    %c0_i32_0 = arith.constant 0 : i32
    %2 = arith.cmpi ne, %1, %c0_i32_0 : i32
    scf.if %2 {
      %cst_9 = arith.constant 0.000000e+00 : f32
      %11 = vector.broadcast %cst_9 : f32 to vector<2x32xf32>
      %c0_10 = arith.constant 0 : index
      %c0_11 = arith.constant 0 : index
      %12 = vector.load %arg4[%c0_10, %c0_11] : memref<2x32xf32, #tpu.memory_space<vmem>>, vector<2x32xf32>
      tpu.vector_store %arg4[%c0_10, %c0_11], %11 {strides = array<i32>} : memref<2x32xf32, #tpu.memory_space<vmem>>, vector<2x32xf32>,
    } else {
    }
    %c0 = arith.constant 0 : index
    %c0_1 = arith.constant 0 : index
    %3 = vector.load %arg4[%c0, %c0_1] : memref<2x32xf32, #tpu.memory_space<vmem>>, vector<2x32xf32>
    %c0_2 = arith.constant 0 : index
    %c0_3 = arith.constant 0 : index
    %c0_4 = arith.constant 0 : index
    %4 = vector.load %arg3[%c0_2, %c0_3, %c0_4] : memref<2x8x32xf32, #tpu.memory_space<vmem>>, vector<2x8x32xf32>
    %cst = arith.constant dense<0.000000e+00> : vector<2x32xf32>
    %5 = vector.multi_reduction <add>, %4, %cst [1] : vector<2x8x32xf32> to vector<2x32xf32>
    %6 = arith.addf %3, %5 : vector<2x32xf32>
    %c0_5 = arith.constant 0 : index
    %c0_6 = arith.constant 0 : index
    %7 = vector.load %arg4[%c0_5, %c0_6] : memref<2x32xf32, #tpu.memory_space<vmem>>, vector<2x32xf32>
    tpu.vector_store %arg4[%c0_5, %c0_6], %6 {strides = array<i32>} : memref<2x32xf32, #tpu.memory_space<vmem>>, vector<2x32xf32>,
    %c0_i32_7 = arith.constant 0 : i32
    %8 = arith.cmpi eq, %arg2, %c0_i32_7 : i32
    %9 = arith.extui %8 : i1 to i32
    %c0_i32_8 = arith.constant 0 : i32
    %10 = arith.cmpi ne, %9, %c0_i32_8 : i32
    scf.if %10 {
      %c0_9 = arith.constant 0 : index
      %c0_10 = arith.constant 0 : index
      %11 = vector.load %arg4[%c0_9, %c0_10] : memref<2x32xf32, #tpu.memory_space<vmem>>, vector<2x32xf32>
      %cst_11 = arith.constant 1.250000e-01 : f32
      %12 = vector.broadcast %cst_11 : f32 to vector<2x32xf32>
      %13 = arith.mulf %11, %12 : vector<2x32xf32>
      %c0_12 = arith.constant 0 : index
      %c0_13 = arith.constant 0 : index
      %14 = vector.load %arg4[%c0_12, %c0_13] : memref<2x32xf32, #tpu.memory_space<vmem>>, vector<2x32xf32>
      tpu.vector_store %arg4[%c0_12, %c0_13], %13 {strides = array<i32>} : memref<2x32xf32, #tpu.memory_space<vmem>>, vector<2x32xf32>,
    } else {
    }
    return
  }
  func.func @transform_0(%arg0: i32, %arg1: i32, %arg2: i32) -> (i32, i32, i32) {
    %c0_i32 = arith.constant 0 : i32
    return %arg0, %arg2, %arg1 : i32, i32, i32
  }
  func.func @transform_1(%arg0: i32, %arg1: i32, %arg2: i32) -> (i32, i32) {
    %c0_i32 = arith.constant 0 : i32
    return %arg0, %arg1 : i32, i32
  }
}

</mosaic_0001>

<bundles_post_ra>
// kernel: tpu_custom_call.1
= control target key start
LH: loop header
LB: loop body
LE: loop exit
PB: predicated region body
PF: predicated region fallthrough
CT: control target
= control target key end

     0   :  { %6 = vsyncpa [#allocation3], 0  ;;  %s171_s0 = inlined_call_operand.hbm [shape: f32[2,8,32], index: 0, kind: input, shape index: {}]   ;;  %s172_s1 = inlined_call_operand.hbm [shape: f32[2,32], index: 1, kind: output, shape index: {}]  }
   0x1   :  { %7 = vsyncpa [#allocation4], 0  ;;  %s129_s6 = smov [#allocation2]   ;;  %s81_s10 = scalar_lea.hbm %s171_s0, 256 }
   0x2   :  { %s13_s7 = sshll.u32 %s129_s6, 4  ;;  %p82_p0 = scmp.ne.s32.totalorder %s171_s0, %s81_s10  ;;  %s14_s7 = int_to_ptr.vmem [resolvable:$true] %s13_s7 }
   0x3   :  { %p85_p1 = scmp.lt.u32.totalorder %s81_s10, %s171_s0 }
   0x5   :  { %p87_p2 = pnand %p85_p1, %p82_p0 }
   0x7   :  { %90 = shalt.err (!%p87_p2)
}
   0x8   :  { %s91_s15 = scalar_lea.vmem %s14_s7, 256  ;;  %p96_p4 = scmp.lt.s32.totalorder %s14_s7, %s14_s7 }
   0x9   :  { %p92_p3 = scmp.ne.s32.totalorder %s14_s7, %s91_s15  ;;  %p97_p5 = scmp.lt.s32.totalorder %s91_s15, %s91_s15 }
   0xb   :  { %p98_p6 = por %p97_p5, %p96_p4 }
   0xd   :  { %p99_p7 = pnand %p98_p6, %p92_p3 }
   0xf   :  { %102 = shalt.err (!%p99_p7)
}
  0x10   :  { %s130_s16 = smov 128   ;;  %s131_s17 = smov 8  }
  0x11   :  { %19 = dma.hbm_to_vmem [thread:$0]  %s171_s0, 256, %s14_s7, [#allocation3], %s130_s16, %s130_s16, %s131_s17  }
  0x12   :  { %125 = dma.done.wait [#allocation3], 256  }
  0x13   :  { %126 = vsyncadd [#allocation3], 4294967040  ;;  %vm27_vm0 = vcmask 254976   ;;  %v132_v0 = vmov 0.0   ;;  %vm32_vm1 = vcmask 261120   ;;  %v30_v1 = vld [vmem:[#allocation2] sm:$0xff] }
  0x14   :  { %28 = vst.msk [vmem:[#allocation5] sm:$0x3] %vm27_vm0, %v132_v0  ;;  %v31_v2 = vld [vmem:[#allocation2 + $0x8] sm:$0xff]  ;;  %v33_v3 = vsel %vm32_vm1, %v30_v1, 0.0  ;;  %vm49_vm2 = vcmask 1041409   ;;  %s133_s0 = smov [#allocation5]  }
  0x15   :  { %v40_v4 = vsel %vm32_vm1, %v31_v2, 0.0  ;;  %v34_v5 = vrot.slane %v33_v3, 4  ;;  %s67_s20 = sshll.u32 %s133_s0, 4  ;;  %s68_s20 = int_to_ptr.vmem [resolvable:$true] %s67_s20 }
  0x16   :  { %v41_v6 = vrot.slane %v40_v4, 4  ;;  %s103_s21 = scalar_lea.vmem %s68_s20, 32  ;;  %p108_p9 = scmp.lt.s32.totalorder %s68_s20, %s68_s20 }
  0x17   :  { %v35_v7 = vadd.f32 %v34_v5, %v33_v3  ;;  %p104_p8 = scmp.ne.s32.totalorder %s68_s20, %s103_s21  ;;  %p109_p10 = scmp.lt.s32.totalorder %s103_s21, %s103_s21 }
  0x18   :  { %v42_v8 = vadd.f32 %v41_v6, %v40_v4 }
  0x19   :  { %v36_v9 = vrot.slane %v35_v7, 2  ;;  %p110_p11 = por %p109_p10, %p108_p9 }
  0x1a   :  { %v43_v10 = vrot.slane %v42_v8, 2 }
  0x1b   :  { %v37_v11 = vadd.f32 %v36_v9, %v35_v7  ;;  %v29_v15 = vld [vmem:[#allocation5] sm:$0x3]  ;;  %p111_p12 = pnand %p110_p11, %p104_p8 }
  0x1c   :  { %v44_v12 = vadd.f32 %v43_v10, %v42_v8 }
  0x1d   :  { %v38_v13 = vrot.slane %v37_v11, 1 }
  0x1e   :  { %v45_v14 = vrot.slane %v44_v12, 1 }
  0x1f   :  { %v39_v16 = vadd.f32 %v38_v13, %v37_v11 }
  0x20   :  { %v46_v17 = vadd.f32 %v45_v14, %v44_v12 }
  0x22   :  { %v50_v18 = vsel %vm49_vm2, %v46_v17, %v39_v16 }
  0x23   :  { %v52_v19 = vadd.f32 %v50_v18, %v29_v15 }
  0x25   :  { %54 = vst.msk [vmem:[#allocation5] sm:$0x3] %vm27_vm0, %v52_v19 }
  0x2c   :  { %v58_v20 = vld [vmem:[#allocation5] sm:$0x3] }
  0x2d   :  { %v59_v21 = vmul.f32 0.125, %v58_v20 }
  0x2f   :  { %60 = vst.msk [vmem:[#allocation5] sm:$0x3] %vm27_vm0, %v59_v21 }
  0x30   :  { %114 = shalt.err (!%p111_p12)
}
  0x31   :  { %s115_s24 = scalar_lea.hbm %s172_s1, 32 }
  0x32   :  { %p116_p13 = scmp.ne.s32.totalorder %s172_s1, %s115_s24  ;;  %p119_p0 = scmp.lt.u32.totalorder %s115_s24, %s172_s1 }
  0x34   :  { %p121_p1 = pnand %p119_p0, %p116_p13 }
  0x36   :  { %124 = shalt.err (!%p121_p1)
}
  0x37   :  { %70 = dma.vmem_to_hbm [thread:$0]  %s68_s20, 32, %s172_s1, [#allocation4]  }
  0x38   :  { %127 = dma.done.wait [#allocation4], 32  }
  0x39   :  { %128 = vsyncadd [#allocation4], 4294967264 }
  0x3a   :  { %74 = vsyncpa [#allocation3], 1 }
  0x3b   :  { %75 = vsyncpa [#allocation4], 1 }

</bundles_post_ra>
